<compile_context>
chip_gen: v6e
topology: v6e:2x2x1
jax: 0.10.0
libtpu: 0.0.40
codegen_flags: <defaults>
</compile_context>

<pallas_src>
import functools
import math

import jax
import jax.numpy as jnp
from jax import lax
from jax.experimental import pallas as pl
from jax.experimental.pallas import tpu as pltpu


def _round_up(x: int, m: int) -> int:
    return (x + m - 1) // m * m


def _gelu_f32(y, approximate: str):
    if approximate == "tanh":
        # 0.5 * y * (1 + tanh(sqrt(2/pi) * (y + 0.044715 * y^3)))
        c = math.sqrt(2.0 / math.pi)
        return 0.5 * y * (1.0 + jnp.tanh(c * (y + 0.044715 * y * y * y)))
    # exact GELU: 0.5 * y * (1 + erf(y / sqrt(2)))
    return 0.5 * y * (1.0 + lax.erf(y * (1.0 / math.sqrt(2.0))))


def _gelu_linear_kernel_single_k(x_ref, w_ref, b_ref, o_ref, *, approximate: str):
    # Whole K contraction in one tile: no accumulator scratch needed.
    # x_ref: (tm, K)   w_ref: (tn, K)   b_ref: (1, tn)   o_ref: (tm, tn)
    y = lax.dot_general(
        x_ref[...], w_ref[...],
        dimension_numbers=(((1,), (1,)), ((), ())),      # contract K with K
        preferred_element_type=jnp.float32)
    y = y + b_ref[...].astype(jnp.float32)
    o_ref[...] = _gelu_f32(y, approximate).astype(o_ref.dtype)


def _gelu_linear_kernel_multi_k(x_ref, w_ref, b_ref, o_ref, acc_ref, *,
                                approximate: str):
    # General K-reduction path (grid K axis >= 2).
    # x_ref: (tm, tk)  w_ref: (tn, tk)  b_ref: (1, tn)
    # o_ref: (tm, tn)  acc_ref: (tm, tn) f32 scratch, resident across K.
    k = pl.program_id(2)
    nk = pl.num_programs(2)

    partial = lax.dot_general(
        x_ref[...], w_ref[...],
        dimension_numbers=(((1,), (1,)), ((), ())),      # contract K with K
        preferred_element_type=jnp.float32)

    @pl.when(k == 0)
    def _():
        acc_ref[...] = partial                           # no zero-init round-trip

    @pl.when(jnp.logical_and(k > 0, k < nk - 1))
    def _():
        acc_ref[...] += partial

    @pl.when(k == nk - 1)
    def _():
        # Fuse last partial directly into the epilogue (skip one scratch store).
        y = acc_ref[...] + partial + b_ref[...].astype(jnp.float32)
        o_ref[...] = _gelu_f32(y, approximate).astype(o_ref.dtype)


def _vmem_limit_bytes(tm: int, tn: int, tk: int, itemsize: int,
                      needs_acc: bool) -> int:
    # double-buffered x / W / out / bias tiles (+ optional f32 accumulator)
    need = 2 * (tm * tk + tk * tn + tm * tn + tn) * itemsize
    if needs_acc:
        need += tm * tn * 4
    cap = 64 << 20  # conservative fallback (v7x per-TC physical VMEM)
    try:
        cap = pltpu.get_tpu_info().vmem_capacity_bytes
    except Exception:
        pass
    limit = max(2 * need, 32 << 20)
    limit = min(limit, int(cap * 0.75))
    limit = max(limit, need + (8 << 20))  # never starve the pipeline
    return int(limit)


def gelu_proj(hidden_states: jax.Array,
              weight: jax.Array,     # (dim_out, dim_in)  -- PyTorch Linear layout
              bias: jax.Array,       # (dim_out,)
              approximate: str = "none",
              *,
              tm: int = 256,
              tn: int = 512,
              tk: int = 512,
              compute_dtype=None) -> jax.Array:
    dim_out, dim_in = weight.shape
    orig_shape = hidden_states.shape
    assert orig_shape[-1] == dim_in

    x = hidden_states.reshape(-1, dim_in)
    M = x.shape[0]

    # Clamp tiles to the (layout-rounded) problem size, then pad so the grid is exact.
    tm_eff = min(tm, _round_up(M, 8))
    tn_eff = min(tn, _round_up(dim_out, 128))
    tk_eff = min(tk, _round_up(dim_in, 128))
    Mp = _round_up(M, tm_eff)
    Np = _round_up(dim_out, tn_eff)
    Kp = _round_up(dim_in, tk_eff)

    w = weight                       # keep (dim_out, dim_in); kernel contracts K-with-K
    b = bias.reshape(1, dim_out)

    if compute_dtype is not None:    # e.g. jnp.bfloat16 for v6e/v7x MXU peak
        x = x.astype(compute_dtype)
        w = w.astype(compute_dtype)

    if Mp != M or Kp != dim_in:
        x = jnp.pad(x, ((0, Mp - M), (0, Kp - dim_in)))
    if Np != dim_out or Kp != dim_in:
        w = jnp.pad(w, ((0, Np - dim_out), (0, Kp - dim_in)))
    if Np != dim_out:
        b = jnp.pad(b, ((0, 0), (0, Np - dim_out)))

    grid = (Mp // tm_eff, Np // tn_eff, Kp // tk_eff)
    single_k = grid[2] == 1

    if single_k:
        kernel = functools.partial(_gelu_linear_kernel_single_k,
                                   approximate=approximate)
        scratch_shapes = []
    else:
        kernel = functools.partial(_gelu_linear_kernel_multi_k,
                                   approximate=approximate)
        scratch_shapes = [pltpu.VMEM((tm_eff, tn_eff), jnp.float32)]

    vmem_limit = _vmem_limit_bytes(tm_eff, tn_eff, tk_eff, x.dtype.itemsize,
                                   needs_acc=not single_k)

    out = pl.pallas_call(
        kernel,
        out_shape=jax.ShapeDtypeStruct((Mp, Np), hidden_states.dtype),
        grid_spec=pltpu.PrefetchScalarGridSpec(
            num_scalar_prefetch=0,
            grid=grid,
            in_specs=[
                pl.BlockSpec((tm_eff, tk_eff), lambda i, j, k: (i, k)),  # x tile
                pl.BlockSpec((tn_eff, tk_eff), lambda i, j, k: (j, k)),  # W tile (N,K)
                pl.BlockSpec((1, tn_eff), lambda i, j, k: (0, j)),       # bias tile
            ],
            out_specs=pl.BlockSpec((tm_eff, tn_eff), lambda i, j, k: (i, j)),
            scratch_shapes=scratch_shapes,
        ),
        compiler_params=pltpu.CompilerParams(
            dimension_semantics=("parallel", "parallel", "arbitrary"),
            vmem_limit_bytes=vmem_limit),
    )(x, w, b)

    out = out[:M, :dim_out]
    return out.reshape(*orig_shape[:-1], dim_out)


def _reference(hidden_states, weight, bias, approximate):
    y = hidden_states @ weight.T + bias
    if approximate == "tanh":
        return jax.nn.gelu(y, approximate=True)
    return jax.nn.gelu(y, approximate=False)


if __name__ == "__main__":
    key = jax.random.PRNGKey(0)
    batch, seq, dim_in, dim_out = 2, 8, 128, 256

    k_x, k_w, k_b = jax.random.split(key, 3)
    # Deterministic PyTorch-Linear-style init: U(-1/sqrt(dim_in), 1/sqrt(dim_in))
    bound = 1.0 / math.sqrt(dim_in)
    weight = jax.random.uniform(k_w, (dim_out, dim_in), jnp.float32, -bound, bound)
    bias = jax.random.uniform(k_b, (dim_out,), jnp.float32, -bound, bound)
    hidden_states = jax.random.normal(k_x, (batch, seq, dim_in), jnp.float32)

    # approximate='none' (the module default) -- exercises the single-K fast path
    out = jax.block_until_ready(gelu_proj(hidden_states, weight, bias, "none"))
    ref = _reference(hidden_states, weight, bias, "none")
    assert out.shape == (batch, seq, dim_out)
    assert jnp.allclose(out, ref, atol=1e-5, rtol=1e-5), "mismatch vs reference"

    # tanh approximation path
    out_t = jax.block_until_ready(gelu_proj(hidden_states, weight, bias, "tanh"))
    ref_t = _reference(hidden_states, weight, bias, "tanh")
    assert jnp.allclose(out_t, ref_t, atol=1e-5, rtol=1e-5), "tanh mismatch"

    # non-divisible shapes exercise the padding path
    hs_odd = jax.random.normal(k_x, (3, 5, dim_in), jnp.float32)
    out_o = jax.block_until_ready(gelu_proj(hs_odd, weight, bias, "none"))
    ref_o = _reference(hs_odd, weight, bias, "none")
    assert jnp.allclose(out_o, ref_o, atol=1e-5, rtol=1e-5), "padded mismatch"

    # multi-K reduction path (small tk forces several K grid steps + accumulator)
    out_mk = jax.block_until_ready(
        gelu_proj(hidden_states, weight, bias, "none", tk=64))
    assert jnp.allclose(out_mk, ref, atol=1e-5, rtol=1e-5), "multi-K mismatch"

    print("KERNEL_OK")
</pallas_src>

<mosaic_0001>
module attributes {stable_mosaic.version = 11 : i64} {
  func.func @_gelu_linear_kernel_single_k(%arg0: i32, %arg1: i32, %arg2: i32, %arg3: memref<16x128xf32, #tpu.memory_space<vmem>>, %arg4: memref<256x128xf32, #tpu.memory_space<vmem>>, %arg5: memref<1x256xf32, #tpu.memory_space<vmem>>, %arg6: memref<16x256xf32, #tpu.memory_space<vmem>>) attributes {dimension_semantics = [#tpu.dimension_semantics<parallel>, #tpu.dimension_semantics<parallel>, #tpu.dimension_semantics<arbitrary>], iteration_bounds = array<i64: 1, 1, 1>, scalar_prefetch = 0 : i64, scratch_operands = 0 : i64, tpu.core_type = #tpu.core_type<tc>, window_params = [{transform_indices = @transform_0, window_bounds = array<i64: 16, 128>}, {transform_indices = @transform_1, window_bounds = array<i64: 256, 128>}, {transform_indices = @transform_2, window_bounds = array<i64: 1, 256>}, {transform_indices = @transform_3, window_bounds = array<i64: 16, 256>}]} {
    %c0 = arith.constant 0 : index
    %c0_0 = arith.constant 0 : index
    %0 = vector.load %arg3[%c0, %c0_0] : memref<16x128xf32, #tpu.memory_space<vmem>>, vector<16x128xf32>
    %c0_1 = arith.constant 0 : index
    %c0_2 = arith.constant 0 : index
    %1 = vector.load %arg4[%c0_1, %c0_2] : memref<256x128xf32, #tpu.memory_space<vmem>>, vector<256x128xf32>
    %cst = arith.constant dense<0.000000e+00> : vector<16x256xf32>
    %2 = tpu.matmul %0, %1, %cst {dimension_numbers = #tpu.dot_dimension_numbers<[1], [1], [0], [0], [0, 0, 1, 0], [], []>} : vector<16x128xf32>, vector<256x128xf32>, vector<16x256xf32> -> vector<16x256xf32>
    %c0_3 = arith.constant 0 : index
    %c0_4 = arith.constant 0 : index
    %3 = vector.load %arg5[%c0_3, %c0_4] : memref<1x256xf32, #tpu.memory_space<vmem>>, vector<1x256xf32>
    %4 = vector.broadcast %3 : vector<1x256xf32> to vector<16x256xf32>
    %5 = arith.addf %2, %4 : vector<16x256xf32>
    %cst_5 = arith.constant 5.000000e-01 : f32
    %6 = vector.broadcast %cst_5 : f32 to vector<16x256xf32>
    %7 = arith.mulf %6, %5 : vector<16x256xf32>
    %cst_6 = arith.constant 0.707106769 : f32
    %8 = vector.broadcast %cst_6 : f32 to vector<16x256xf32>
    %9 = arith.mulf %5, %8 : vector<16x256xf32>
    %10 = math.erf %9 : vector<16x256xf32>
    %cst_7 = arith.constant 1.000000e+00 : f32
    %11 = vector.broadcast %cst_7 : f32 to vector<16x256xf32>
    %12 = arith.addf %11, %10 : vector<16x256xf32>
    %13 = arith.mulf %7, %12 : vector<16x256xf32>
    %c0_8 = arith.constant 0 : index
    %c0_9 = arith.constant 0 : index
    %14 = vector.load %arg6[%c0_8, %c0_9] : memref<16x256xf32, #tpu.memory_space<vmem>>, vector<16x256xf32>
    tpu.vector_store %arg6[%c0_8, %c0_9], %13 {strides = array<i32>} : memref<16x256xf32, #tpu.memory_space<vmem>>, vector<16x256xf32>,
    return
  }
  func.func @transform_0(%arg0: i32, %arg1: i32, %arg2: i32) -> (i32, i32) {
    %c0_i32 = arith.constant 0 : i32
    return %arg0, %arg2 : i32, i32
  }
  func.func @transform_1(%arg0: i32, %arg1: i32, %arg2: i32) -> (i32, i32) {
    %c0_i32 = arith.constant 0 : i32
    return %arg1, %arg2 : i32, i32
  }
  func.func @transform_2(%arg0: i32, %arg1: i32, %arg2: i32) -> (i32, i32) {
    %c0_i32 = arith.constant 0 : i32
    %c0_i32_0 = arith.constant 0 : i32
    return %c0_i32, %arg1 : i32, i32
  }
  func.func @transform_3(%arg0: i32, %arg1: i32, %arg2: i32) -> (i32, i32) {
    %c0_i32 = arith.constant 0 : i32
    return %arg0, %arg1 : i32, i32
  }
}

</mosaic_0001>

<bundles_post_ra>
// kernel: tpu_custom_call.1
= control target key start
LH: loop header
LB: loop body
LE: loop exit
PB: predicated region body
PF: predicated region fallthrough
CT: control target
= control target key end

     0   :  { %8 = vsyncpa [#allocation3], 0  ;;  %s404_s0 = inlined_call_operand.hbm [shape: f32[16,128], index: 0, kind: input, shape index: {}]   ;;  %s405_s1 = inlined_call_operand.hbm [shape: f32[256,128], index: 1, kind: input, shape index: {}]   ;;  %s406_s2 = inlined_call_operand.vmem [shape: f32[1,256], index: 2, kind: input, shape index: {}]   ;;  %s407_s3 = inlined_call_operand.hbm [shape: f32[16,256], index: 3, kind: output, shape index: {}]  }
   0x1   :  { %9 = vsyncpa [#allocation6], 0 }
   0x2   :  { %10 = vsyncpa [#allocation4], 0  ;;  %s357_s12 = smov [#allocation2]  }
   0x3   :  { %s16_s13 = sshll.u32 %s357_s12, 4  ;;  %s17_s13 = int_to_ptr.vmem [resolvable:$true] %s16_s13 }
   0x4   :  { %s299_s14 = scalar_lea.vmem %s17_s13, 256  ;;  %p304_p1 = scmp.lt.s32.totalorder %s17_s13, %s17_s13 }
   0x5   :  { %p300_p0 = scmp.ne.s32.totalorder %s17_s13, %s299_s14  ;;  %p305_p2 = scmp.lt.s32.totalorder %s299_s14, %s299_s14 }
   0x7   :  { %p306_p3 = por %p305_p2, %p304_p1 }
   0x9   :  { %p307_p4 = pnand %p306_p3, %p300_p0 }
   0xb   :  { %310 = shalt.err (!%p307_p4)
}
   0xc   :  { %s358_s15 = smov 128   ;;  %s359_s16 = smov 8  }
   0xd   :  { %22 = dma.hbm_to_vmem [thread:$0]  %s404_s0, 256, %s17_s13, [#allocation3], %s358_s15, %s358_s15, %s359_s16  }
   0xe   :  { %s360_s19 = smov [#allocation5]  }
   0xf   :  { %s28_s20 = sshll.u32 %s360_s19, 4  ;;  %s29_s20 = int_to_ptr.vmem [resolvable:$true] %s28_s20 }
  0x10   :  { %s319_s21 = scalar_lea.vmem %s29_s20, 4096  ;;  %p324_p6 = scmp.lt.s32.totalorder %s29_s20, %s29_s20 }
  0x11   :  { %p320_p5 = scmp.ne.s32.totalorder %s29_s20, %s319_s21  ;;  %p325_p7 = scmp.lt.s32.totalorder %s319_s21, %s319_s21 }
  0x13   :  { %p326_p8 = por %p325_p7, %p324_p6 }
  0x15   :  { %p327_p9 = pnand %p326_p8, %p320_p5 }
  0x17   :  { %330 = shalt.err (!%p327_p9)
}
  0x18   :  { %34 = dma.hbm_to_vmem [thread:$0]  %s405_s1, 4096, %s29_s20, [#allocation6], %s358_s15, %s358_s15, %s359_s16  }
  0x19   :  { %351 = dma.done.wait [#allocation3], 256  }
  0x1a   :  { %352 = vsyncadd [#allocation3], 4294967040 }
  0x1b   :  { %353 = dma.done.wait [#allocation6], 4096  }
  0x1c   :  { %354 = vsyncadd [#allocation6], 4294963200  ;;  %v76_v0 = vld [vmem:[#allocation5 + $0xf8] sm:$0xff]  ;;  %v75_v2 = vld [vmem:[#allocation5 + $0xf0] sm:$0xff]  ;;  %v79_v34 = vlaneseq }
  0x1d   :  { %v60_v1 = vld [vmem:[#allocation5 + $0x78] sm:$0xff]  ;;  %208 = vmatprep.subr.mxu0 %v76_v0  ;;  %244 = vmatprep.subr.mxu1 %v76_v0  ;;  %v59_v3 = vld [vmem:[#allocation5 + $0x70] sm:$0xff]  ;;  %v74_v4 = vld [vmem:[#allocation5 + $0xe8] sm:$0xff] }
  0x1e   :  { %209 = vmatpush3.xpose.msra.mxu0 %v60_v1  ;;  %260 = vmatpush3.xpose.msra.mxu1 %v60_v1  ;;  %v58_v5 = vld [vmem:[#allocation5 + $0x68] sm:$0xff]  ;;  %v73_v6 = vld [vmem:[#allocation5 + $0xe0] sm:$0xff]  ;;  %v390_v7 = vld [vmem:[#allocation2] sm:$0xff]  ;;  %v80_v35 = vshrl.u32 %v79_v34, 7 }
  0x1f   :  { %210 = vmatprep.subr.mxu0 %v75_v2  ;;  %245 = vmatprep.subr.mxu1 %v75_v2  ;;  %v57_v8 = vld [vmem:[#allocation5 + $0x60] sm:$0xff]  ;;  %v392_v9 = vld [vmem:[#allocation2 + $0x8] sm:$0xff]  ;;  %v71_v12 = vld [vmem:[#allocation5 + $0xd0] sm:$0xff] }
  0x20   :  { %v72_v10 = vld [vmem:[#allocation5 + $0xd8] sm:$0xff]  ;;  %240 = vmatprep.mubr.f32.mxu0 %v390_v7  ;;  %242 = vmatprep.mubr.f32.mxu1 %v392_v9  ;;  %v55_v13 = vld [vmem:[#allocation5 + $0x50] sm:$0xff]  ;;  %v70_v14 = vld [vmem:[#allocation5 + $0xc8] sm:$0xff]  ;;  %v81_v36 = vsub.s32 0, %v80_v35  ;;  %v85_v38 = vsub.s32 1, %v80_v35 }
  0x21   :  { %v56_v11 = vld [vmem:[#allocation5 + $0x58] sm:$0xff]  ;;  %v54_v15 = vld [vmem:[#allocation5 + $0x48] sm:$0xff]  ;;  %v69_v16 = vld [vmem:[#allocation5 + $0xc0] sm:$0xff] }
  0x22   :  { %211 = vmatpush3.xpose.msra.mxu0 %v59_v3  ;;  %261 = vmatpush3.xpose.msra.mxu1 %v59_v3  ;;  %v53_v17 = vld [vmem:[#allocation5 + $0x40] sm:$0xff]  ;;  %v68_v18 = vld [vmem:[#allocation5 + $0xb8] sm:$0xff]  ;;  %v67_v20 = vld [vmem:[#allocation5 + $0xb0] sm:$0xff] }
  0x23   :  { %212 = vmatprep.subr.mxu0 %v74_v4  ;;  %246 = vmatprep.subr.mxu1 %v74_v4  ;;  %v52_v19 = vld [vmem:[#allocation5 + $0x38] sm:$0xff]  ;;  %v51_v21 = vld [vmem:[#allocation5 + $0x30] sm:$0xff]  ;;  %v66_v22 = vld [vmem:[#allocation5 + $0xa8] sm:$0xff] }
  0x24   :  { %v50_v23 = vld [vmem:[#allocation5 + $0x28] sm:$0xff]  ;;  %v65_v24 = vld [vmem:[#allocation5 + $0xa0] sm:$0xff]  ;;  %v64_v26 = vld [vmem:[#allocation5 + $0x98] sm:$0xff] }
  0x25   :  { %v49_v25 = vld [vmem:[#allocation5 + $0x20] sm:$0xff]  ;;  %v48_v27 = vld [vmem:[#allocation5 + $0x18] sm:$0xff]  ;;  %v63_v28 = vld [vmem:[#allocation5 + $0x90] sm:$0xff] }
  0x26   :  { %213 = vmatpush3.xpose.msra.mxu0 %v58_v5  ;;  %262 = vmatpush3.xpose.msra.mxu1 %v58_v5  ;;  %v47_v29 = vld [vmem:[#allocation5 + $0x10] sm:$0xff]  ;;  %v62_v30 = vld [vmem:[#allocation5 + $0x88] sm:$0xff]  ;;  %v61_v32 = vld [vmem:[#allocation5 + $0x80] sm:$0xff] }
  0x27   :  { %214 = vmatprep.subr.mxu0 %v73_v6  ;;  %247 = vmatprep.subr.mxu1 %v73_v6  ;;  %v46_v31 = vld [vmem:[#allocation5 + $0x8] sm:$0xff]  ;;  %v45_v33 = vld [vmem:[#allocation5] sm:$0xff]  ;;  %v77_v37 = vld [vmem:[%s406_s2] sm:$0x3]  ;;  %s361_s2 = smov [#allocation7]  }
  0x28   :  { %v82_v39 = vrot.slane %v77_v37, %v81_v36  ;;  %v86_v42 = vrot.slane %v77_v37, %v85_v38  ;;  %s195_s24 = sshll.u32 %s361_s2, 4  ;;  %s196_s24 = int_to_ptr.vmem [resolvable:$true] %s195_s24 }
  0x29   :  { %s331_s25 = scalar_lea.vmem %s196_s24, 512  ;;  %p336_p11 = scmp.lt.s32.totalorder %s196_s24, %s196_s24 }
  0x2a   :  { %215 = vmatpush3.xpose.msra.mxu0 %v57_v8  ;;  %263 = vmatpush3.xpose.msra.mxu1 %v57_v8  ;;  %p332_p10 = scmp.ne.s32.totalorder %s196_s24, %s331_s25  ;;  %p337_p12 = scmp.lt.s32.totalorder %s331_s25, %s331_s25 }
  0x2b   :  { %216 = vmatprep.subr.mxu0 %v72_v10  ;;  %248 = vmatprep.subr.mxu1 %v72_v10 }
  0x2c   :  { %p338_p13 = por %p337_p12, %p336_p11 }
  0x2e   :  { %217 = vmatpush3.xpose.msra.mxu0 %v56_v11  ;;  %264 = vmatpush3.xpose.msra.mxu1 %v56_v11  ;;  %p339_p0 = pnand %p338_p13, %p332_p10 }
  0x2f   :  { %218 = vmatprep.subr.mxu0 %v71_v12  ;;  %249 = vmatprep.subr.mxu1 %v71_v12 }
  0x32   :  { %219 = vmatpush3.xpose.msra.mxu0 %v55_v13  ;;  %265 = vmatpush3.xpose.msra.mxu1 %v55_v13 }
  0x33   :  { %220 = vmatprep.subr.mxu0 %v70_v14  ;;  %250 = vmatprep.subr.mxu1 %v70_v14 }
  0x36   :  { %221 = vmatpush3.xpose.msra.mxu0 %v54_v15  ;;  %266 = vmatpush3.xpose.msra.mxu1 %v54_v15 }
  0x37   :  { %222 = vmatprep.subr.mxu0 %v69_v16  ;;  %251 = vmatprep.subr.mxu1 %v69_v16 }
  0x3a   :  { %223 = vmatpush3.xpose.msra.mxu0 %v53_v17  ;;  %267 = vmatpush3.xpose.msra.mxu1 %v53_v17 }
  0x3b   :  { %224 = vmatprep.subr.mxu0 %v68_v18  ;;  %252 = vmatprep.subr.mxu1 %v68_v18 }
  0x3e   :  { %225 = vmatpush3.xpose.msra.mxu0 %v52_v19  ;;  %268 = vmatpush3.xpose.msra.mxu1 %v52_v19 }
  0x3f   :  { %226 = vmatprep.subr.mxu0 %v67_v20  ;;  %253 = vmatprep.subr.mxu1 %v67_v20 }
  0x42   :  { %227 = vmatpush3.xpose.msra.mxu0 %v51_v21  ;;  %269 = vmatpush3.xpose.msra.mxu1 %v51_v21 }
  0x43   :  { %228 = vmatprep.subr.mxu0 %v66_v22  ;;  %254 = vmatprep.subr.mxu1 %v66_v22 }
  0x46   :  { %229 = vmatpush3.xpose.msra.mxu0 %v50_v23  ;;  %270 = vmatpush3.xpose.msra.mxu1 %v50_v23 }
  0x47   :  { %230 = vmatprep.subr.mxu0 %v65_v24  ;;  %255 = vmatprep.subr.mxu1 %v65_v24 }
  0x4a   :  { %231 = vmatpush3.xpose.msra.mxu0 %v49_v25  ;;  %271 = vmatpush3.xpose.msra.mxu1 %v49_v25 }
  0x4b   :  { %232 = vmatprep.subr.mxu0 %v64_v26  ;;  %256 = vmatprep.subr.mxu1 %v64_v26 }
  0x4e   :  { %233 = vmatpush3.xpose.msra.mxu0 %v48_v27  ;;  %272 = vmatpush3.xpose.msra.mxu1 %v48_v27 }
  0x4f   :  { %234 = vmatprep.subr.mxu0 %v63_v28  ;;  %257 = vmatprep.subr.mxu1 %v63_v28 }
  0x52   :  { %235 = vmatpush3.xpose.msra.mxu0 %v47_v29  ;;  %273 = vmatpush3.xpose.msra.mxu1 %v47_v29 }
  0x53   :  { %236 = vmatprep.subr.mxu0 %v62_v30  ;;  %258 = vmatprep.subr.mxu1 %v62_v30 }
  0x56   :  { %237 = vmatpush3.xpose.msra.mxu0 %v46_v31  ;;  %274 = vmatpush3.xpose.msra.mxu1 %v46_v31 }
  0x57   :  { %238 = vmatprep.subr.mxu0 %v61_v32  ;;  %259 = vmatprep.subr.mxu1 %v61_v32 }
  0x5a   :  { %239 = vmatpush3.xpose.msra.mxu0 %v45_v33  ;;  %275 = vmatpush3.xpose.msra.mxu1 %v45_v33 }
  0x5d   :  { %241 = vmatmul.mubr.f32.vlgmr.msra.gmra.mxu0 %v390_v7  ;;  %243 = vmatmul.mubr.f32.vlgmr.msra.gmra.mxu1 %v392_v9 }
 0x11d   :  { %v155_v40 = vpop.f32.mrf.mxu0  ;;  %v161_v41 = vpop.f32.mrf.mxu1 }
 0x11e   :  { %v156_v43 = vadd.f32 %v155_v40, %v82_v39  ;;  %v162_v44 = vadd.f32 %v161_v41, %v82_v39 }
 0x11f   :  { %v157_v45 = vpop.f32.mrf.mxu0  ;;  %v163_v46 = vpop.f32.mrf.mxu1 }
 0x120   :  { %v170_v47 = vmul.f32 0.70710677, %v156_v43  ;;  %v172_v48 = vmul.f32 0.70710677, %v162_v44  ;;  %v158_v49 = vadd.f32 %v157_v45, %v86_v42  ;;  %v164_v50 = vadd.f32 %v163_v46, %v86_v42 }
 0x121   :  { %v166_v55 = vmul.f32 0.5, %v156_v43  ;;  %v168_v57 = vmul.f32 0.5, %v162_v44 }
 0x122   :  { %283 = verf.f32 %v170_v47  ;;  %v171_v51 = vmul.f32 0.70710677, %v158_v49  ;;  %v173_v52 = vmul.f32 0.70710677, %v164_v50  ;;  %v167_v63 = vmul.f32 0.5, %v158_v49 }
 0x123   :  { %285 = verf.f32 %v172_v48  ;;  %v169_v1 = vmul.f32 0.5, %v164_v50 }
 0x124   :  { %287 = verf.f32 %v171_v51 }
 0x125   :  { %289 = verf.f32 %v173_v52 }
 0x12f   :  { %v284_v53 = vpop.eup %283 }
 0x130   :  { %v286_v54 = vpop.eup %285  ;;  %v178_v56 = vadd.f32 1.0, %v284_v53 }
 0x131   :  { %v180_v58 = vadd.f32 1.0, %v286_v54  ;;  %v288_v59 = vpop.eup %287 }
 0x132   :  { %v182_v60 = vmul.f32 %v178_v56, %v166_v55  ;;  %v290_v61 = vpop.eup %289  ;;  %v179_v0 = vadd.f32 1.0, %v288_v59 }
 0x133   :  { %v184_v62 = vmul.f32 %v180_v58, %v168_v57  ;;  %v181_v2 = vadd.f32 1.0, %v290_v61 }
 0x134   :  { %186 = vst [vmem:[#allocation7] sm:$0xff] %v182_v60  ;;  %v183_v3 = vmul.f32 %v179_v0, %v167_v63 }
 0x135   :  { %188 = vst [vmem:[#allocation7 + $0x10] sm:$0xff] %v184_v62  ;;  %v185_v4 = vmul.f32 %v181_v2, %v169_v1 }
 0x136   :  { %187 = vst [vmem:[#allocation7 + $0x8] sm:$0xff] %v183_v3 }
 0x137   :  { %189 = vst [vmem:[#allocation7 + $0x18] sm:$0xff] %v185_v4 }
 0x138   :  { %342 = shalt.err (!%p339_p0)
}
 0x139   :  { %s362_s26 = smov 256   ;;  %s363_s27 = smov 16  }
 0x13a   :  { %201 = dma.vmem_to_hbm [thread:$0]  %s196_s24, 512, %s407_s3, [#allocation4], %s362_s26, %s362_s26, %s363_s27  }
 0x13b   :  { %355 = dma.done.wait [#allocation4], 512  }
 0x13c   :  { %356 = vsyncadd [#allocation4], 4294966784 }
 0x13d   :  { %205 = vsyncpa [#allocation3], 1 }
 0x13e   :  { %206 = vsyncpa [#allocation6], 1 }
 0x13f   :  { %207 = vsyncpa [#allocation4], 1 }

</bundles_post_ra>
